<compile_context>
chip_gen: v7x
topology: tpu7x:2x2x1
jax: 0.10.0
libtpu: 0.0.40
codegen_flags: <defaults>
</compile_context>

<pallas_src>
import functools

import jax
import jax.numpy as jnp
from jax.experimental import pallas as pl
from jax.experimental.pallas import tpu as pltpu


def lstm_kernel(x_ref, wx_ref, wh_ref, b_ref, wfc_ref, bfc_ref, out_ref,
                *, T, B, H):
    # x_ref : (T*B, Din) bf16, time-major (row t*B + n = batch n at step t)
    # wx_ref: (Din, 4H) bf16, wh_ref: (H, 4H) bf16, b_ref: (1, 4H) f32
    # wfc_ref: (O, H) f32, bfc_ref: (1, O) f32, out_ref: (B, O) f32
    H4 = 4 * H

    # Input projection for ALL timesteps in one bf16 MXU matmul (f32 accum),
    # bias folded in. Only h @ Wh remains on the serial recurrence.
    xw = (jnp.dot(x_ref[...], wx_ref[...], preferred_element_type=jnp.float32)
          + b_ref[...])                                     # (T*B, 4H) f32
    wh = wh_ref[...]                                        # (H, 4H) bf16

    # Hoisted per-lane affine constants so the 4 gate nonlinearities share ONE
    # full-128-lane tanh per step: sigmoid(x) = 0.5*tanh(0.5*x) + 0.5 on the
    # [i|f|o] lanes, plain tanh on the [g] lanes.
    lane = jax.lax.broadcasted_iota(jnp.int32, (1, H4), 1)
    is_sig = lane < 3 * H
    pre = jnp.where(is_sig, 0.5, 1.0).astype(jnp.float32)   # scale before tanh
    post_m = pre                                            # scale after tanh
    post_a = jnp.where(is_sig, 0.5, 0.0).astype(jnp.float32)

    h = jnp.zeros((B, H), jnp.float32)
    c = jnp.zeros((B, H), jnp.float32)

    # Serial recurrence, statically unrolled (T small & static); h/c stay in
    # vregs, no VMEM round-trip per step.
    # TODO(synk): for long T, stage xw in VMEM scratch + lax.fori_loop(unroll~4)
    #             (vreg pressure / compile time), and hold Wh resident in the
    #             MXU via pltpu.matmul_push_rhs / matmul_acc_lhs; on v7x use
    #             the MRB to accumulate h@Wh directly onto the xw slab.
    for t in range(T):
        gates = (xw[t * B:(t + 1) * B, :]
                 + jnp.dot(h.astype(wh.dtype), wh,
                           preferred_element_type=jnp.float32))      # (B, 4H)
        act = jnp.tanh(gates * pre) * post_m + post_a   # one EUP pass, 4 gates
        i_g = act[:, 0:H]
        f_g = act[:, H:2 * H]
        o_g = act[:, 2 * H:3 * H]
        g_g = act[:, 3 * H:]
        c = f_g * c + i_g * g_g
        h = o_g * jnp.tanh(c)

    # fc head on the last hidden state. O==1: VPU multiply + XLU lane-reduce
    # (no MXU pass for a 1-lane result, no masked 1-lane matmul output).
    O = out_ref.shape[-1]
    if O == 1:
        out_ref[...] = (jnp.sum(h * wfc_ref[...], axis=-1, keepdims=True)
                        + bfc_ref[...])
    else:
        out_ref[...] = (jnp.dot(h, wfc_ref[...].T,
                                preferred_element_type=jnp.float32)
                        + bfc_ref[...])


def pack_lstm_params(w_ih, w_hh, b_ih, b_hh, w_fc, b_fc):
    """PyTorch-layout params -> kernel layout.

    PyTorch packs the 4H axis as [i | f | g | o]; reorder to [i | f | o | g]
    so the sigmoid gates are contiguous, transpose for `x @ W` matmuls, fold
    b_ih + b_hh, and store the MXU operands (Wx, Wh) in bf16.
    """
    def reorder(w4h):                       # (4H, ...) along axis 0
        i, f, g, o = jnp.split(w4h, 4, axis=0)
        return jnp.concatenate([i, f, o, g], axis=0)

    wx = reorder(w_ih).T.astype(jnp.bfloat16)              # (Din, 4H)
    wh = reorder(w_hh).T.astype(jnp.bfloat16)              # (H, 4H)
    b = reorder(b_ih + b_hh)[None, :].astype(jnp.float32)  # (1, 4H)
    wfc = w_fc.astype(jnp.float32)                         # (O, H)
    bfc = b_fc[None, :].astype(jnp.float32)                # (1, O)
    return wx, wh, b, wfc, bfc


def lstm_forward(x, wx, wh, b, wfc, bfc):
    B, T, Din = x.shape
    H = wh.shape[0]
    O = wfc.shape[0]

    # Time-major flatten (layout plumbing only) + bf16 for the MXU input.
    x_tm = jnp.swapaxes(x, 0, 1).reshape(T * B, Din).astype(jnp.bfloat16)

    operands = (x_tm, wx, wh, b, wfc, bfc)
    in_bytes = sum(a.size * a.dtype.itemsize for a in operands)
    out_bytes = B * O * 4
    xw_bytes = T * B * 4 * H * 4        # hoisted full-sequence projection (f32)
    # Raise the scoped-VMEM limit above the default when shapes scale, but cap
    # at v7x's 64 MiB physical VMEM.
    # TODO(synk): if xw_bytes approaches the cap, chunk the input projection
    #             over T instead of holding the full sequence resident.
    vmem_limit = int(min(max(4 * (in_bytes + out_bytes + xw_bytes), 16 << 20),
                         64 << 20))

    cost = pl.CostEstimate(
        flops=2 * T * B * Din * 4 * H + 2 * T * B * H * 4 * H + 2 * B * H * O,
        transcendentals=T * B * 5 * H,
        bytes_accessed=in_bytes + out_bytes,
    )

    kernel = functools.partial(lstm_kernel, T=T, B=B, H=H)
    vmem = lambda: pl.BlockSpec(memory_space=pltpu.MemorySpace.VMEM)

    # TODO(synk): for large B on v7x, add a leading "parallel" grid axis over
    #             B-chunks so the second TensorCore runs half the batch.
    return pl.pallas_call(
        kernel,
        out_shape=jax.ShapeDtypeStruct((B, O), jnp.float32),
        in_specs=[vmem() for _ in range(6)],
        out_specs=vmem(),
        compiler_params=pltpu.CompilerParams(vmem_limit_bytes=vmem_limit),
        cost_estimate=cost,
    )(*operands)


def lstm_reference(x, w_ih, w_hh, b_ih, b_hh, w_fc, b_fc):
    """Pure-JAX reference with PyTorch nn.LSTM / nn.Linear semantics & layout."""
    B, T, _ = x.shape
    H = w_hh.shape[1]

    def step(carry, x_t):
        h, c = carry
        gates = x_t @ w_ih.T + h @ w_hh.T + b_ih + b_hh
        i_g = jax.nn.sigmoid(gates[:, 0 * H:1 * H])
        f_g = jax.nn.sigmoid(gates[:, 1 * H:2 * H])
        g_g = jnp.tanh(gates[:, 2 * H:3 * H])
        o_g = jax.nn.sigmoid(gates[:, 3 * H:4 * H])
        c = f_g * c + i_g * g_g
        h = o_g * jnp.tanh(c)
        return (h, c), None

    h0 = jnp.zeros((B, H), jnp.float32)
    c0 = jnp.zeros((B, H), jnp.float32)
    (h, _), _ = jax.lax.scan(step, (h0, c0), jnp.swapaxes(x, 0, 1))
    return h @ w_fc.T + b_fc


if __name__ == "__main__":
    # Small shapes consistent with the module: batch=2, seq=8, input=4, hidden=32.
    B, T, Din, H, O = 2, 8, 4, 32, 1

    key = jax.random.PRNGKey(0)
    kx, k1, k2, k3, k4, k5, k6 = jax.random.split(key, 7)

    bound = 1.0 / jnp.sqrt(H)  # PyTorch-style uniform init bound
    x = jax.random.normal(kx, (B, T, Din), jnp.float32)
    # PyTorch-layout parameters (nn.LSTM / nn.Linear):
    w_ih = jax.random.uniform(k1, (4 * H, Din), jnp.float32, -bound, bound)
    w_hh = jax.random.uniform(k2, (4 * H, H), jnp.float32, -bound, bound)
    b_ih = jax.random.uniform(k3, (4 * H,), jnp.float32, -bound, bound)
    b_hh = jax.random.uniform(k4, (4 * H,), jnp.float32, -bound, bound)
    w_fc = jax.random.uniform(k5, (O, H), jnp.float32, -bound, bound)
    b_fc = jax.random.uniform(k6, (O,), jnp.float32, -bound, bound)

    wx, wh, b, wfc, bfc = pack_lstm_params(w_ih, w_hh, b_ih, b_hh, w_fc, b_fc)

    out = lstm_forward(x, wx, wh, b, wfc, bfc)
    out = jax.block_until_ready(out)
    assert out.shape == (B, O)

    # Tight check against a reference using the SAME bf16-quantized x / Wx / Wh
    # (isolates any structural bug from the intentional weight quantization).
    q = lambda a: a.astype(jnp.bfloat16).astype(jnp.float32)
    ref_q = lstm_reference(q(x), q(w_ih), q(w_hh), b_ih, b_hh, w_fc, b_fc)
    assert jnp.allclose(out, ref_q, atol=2e-3, rtol=2e-3), (out, ref_q)

    # Looser check against the full-f32 module semantics (tolerance covers the
    # bf16 storage of x / Wx / Wh, per the perf-review correctness note).
    ref = lstm_reference(x, w_ih, w_hh, b_ih, b_hh, w_fc, b_fc)
    assert jnp.allclose(out, ref, atol=2e-2, rtol=2e-2), (out, ref)

    print("KERNEL_OK")
</pallas_src>

<mosaic_0001>
module attributes {stable_mosaic.version = 11 : i64} {
  func.func @lstm_kernel(%arg0: memref<16x4xbf16, #tpu.memory_space<vmem>>, %arg1: memref<4x128xbf16, #tpu.memory_space<vmem>>, %arg2: memref<32x128xbf16, #tpu.memory_space<vmem>>, %arg3: memref<1x128xf32, #tpu.memory_space<vmem>>, %arg4: memref<1x32xf32, #tpu.memory_space<vmem>>, %arg5: memref<1x1xf32, #tpu.memory_space<vmem>>, %arg6: memref<2x1xf32, #tpu.memory_space<vmem>>) attributes {dimension_semantics = [], scalar_prefetch = 0 : i64, scratch_operands = 0 : i64, tpu.core_type = #tpu.core_type<tc>} {
    %c0 = arith.constant 0 : index
    %c0_0 = arith.constant 0 : index
    %0 = vector.load %arg0[%c0, %c0_0] : memref<16x4xbf16, #tpu.memory_space<vmem>>, vector<16x4xbf16>
    %c0_1 = arith.constant 0 : index
    %c0_2 = arith.constant 0 : index
    %1 = vector.load %arg1[%c0_1, %c0_2] : memref<4x128xbf16, #tpu.memory_space<vmem>>, vector<4x128xbf16>
    %cst = arith.constant dense<0.000000e+00> : vector<16x128xf32>
    %2 = tpu.matmul %0, %1, %cst {dimension_numbers = #tpu.dot_dimension_numbers<[1], [0], [0], [1], [0, 0, 1, 1], [], []>} : vector<16x4xbf16>, vector<4x128xbf16>, vector<16x128xf32> -> vector<16x128xf32>
    %c0_3 = arith.constant 0 : index
    %c0_4 = arith.constant 0 : index
    %3 = vector.load %arg3[%c0_3, %c0_4] : memref<1x128xf32, #tpu.memory_space<vmem>>, vector<1x128xf32>
    %4 = vector.broadcast %3 : vector<1x128xf32> to vector<16x128xf32>
    %5 = arith.addf %2, %4 : vector<16x128xf32>
    %c0_5 = arith.constant 0 : index
    %c0_6 = arith.constant 0 : index
    %6 = vector.load %arg2[%c0_5, %c0_6] : memref<32x128xbf16, #tpu.memory_space<vmem>>, vector<32x128xbf16>
    %7 = tpu.iota {dimensions = array<i32: 1>} : vector<1x128xi32>
    %c96_i32 = arith.constant 96 : i32
    %8 = vector.broadcast %c96_i32 : i32 to vector<1x128xi32>
    %9 = arith.cmpi slt, %7, %8 : vector<1x128xi32>
    %cst_7 = arith.constant 5.000000e-01 : f32
    %cst_8 = arith.constant 1.000000e+00 : f32
    %10 = vector.broadcast %cst_7 : f32 to vector<1x128xf32>
    %11 = vector.broadcast %cst_8 : f32 to vector<1x128xf32>
    %12 = arith.select %9, %10, %11 : vector<1x128xi1>, vector<1x128xf32>
    %cst_9 = arith.constant 5.000000e-01 : f32
    %cst_10 = arith.constant 0.000000e+00 : f32
    %13 = vector.broadcast %cst_9 : f32 to vector<1x128xf32>
    %14 = vector.broadcast %cst_10 : f32 to vector<1x128xf32>
    %15 = arith.select %9, %13, %14 : vector<1x128xi1>, vector<1x128xf32>
    %cst_11 = arith.constant 0.000000e+00 : f32
    %16 = vector.broadcast %cst_11 : f32 to vector<2x32xf32>
    %cst_12 = arith.constant 0.000000e+00 : f32
    %17 = vector.broadcast %cst_12 : f32 to vector<2x32xf32>
    %18 = vector.extract_strided_slice %5 {offsets = [0, 0], sizes = [2, 128], strides = [1, 1]} : vector<16x128xf32> to vector<2x128xf32>
    %19 = arith.truncf %16 : vector<2x32xf32> to vector<2x32xbf16>
    %cst_13 = arith.constant dense<0.000000e+00> : vector<2x128xf32>
    %20 = tpu.matmul %19, %6, %cst_13 {dimension_numbers = #tpu.dot_dimension_numbers<[1], [0], [0], [1], [0, 0, 1, 1], [], []>} : vector<2x32xbf16>, vector<32x128xbf16>, vector<2x128xf32> -> vector<2x128xf32>
    %21 = arith.addf %18, %20 : vector<2x128xf32>
    %22 = vector.broadcast %12 : vector<1x128xf32> to vector<2x128xf32>
    %23 = arith.mulf %21, %22 : vector<2x128xf32>
    %24 = math.tanh %23 : vector<2x128xf32>
    %25 = vector.broadcast %12 : vector<1x128xf32> to vector<2x128xf32>
    %26 = arith.mulf %24, %25 : vector<2x128xf32>
    %27 = vector.broadcast %15 : vector<1x128xf32> to vector<2x128xf32>
    %28 = arith.addf %26, %27 : vector<2x128xf32>
    %29 = vector.extract_strided_slice %28 {offsets = [0, 0], sizes = [2, 32], strides = [1, 1]} : vector<2x128xf32> to vector<2x32xf32>
    %30 = vector.extract_strided_slice %28 {offsets = [0, 32], sizes = [2, 32], strides = [1, 1]} : vector<2x128xf32> to vector<2x32xf32>
    %31 = vector.extract_strided_slice %28 {offsets = [0, 64], sizes = [2, 32], strides = [1, 1]} : vector<2x128xf32> to vector<2x32xf32>
    %32 = vector.extract_strided_slice %28 {offsets = [0, 96], sizes = [2, 32], strides = [1, 1]} : vector<2x128xf32> to vector<2x32xf32>
    %33 = arith.mulf %30, %17 : vector<2x32xf32>
    %34 = arith.mulf %29, %32 : vector<2x32xf32>
    %35 = arith.addf %33, %34 : vector<2x32xf32>
    %36 = math.tanh %35 : vector<2x32xf32>
    %37 = arith.mulf %31, %36 : vector<2x32xf32>
    %38 = vector.extract_strided_slice %5 {offsets = [2, 0], sizes = [2, 128], strides = [1, 1]} : vector<16x128xf32> to vector<2x128xf32>
    %39 = arith.truncf %37 : vector<2x32xf32> to vector<2x32xbf16>
    %cst_14 = arith.constant dense<0.000000e+00> : vector<2x128xf32>
    %40 = tpu.matmul %39, %6, %cst_14 {dimension_numbers = #tpu.dot_dimension_numbers<[1], [0], [0], [1], [0, 0, 1, 1], [], []>} : vector<2x32xbf16>, vector<32x128xbf16>, vector<2x128xf32> -> vector<2x128xf32>
    %41 = arith.addf %38, %40 : vector<2x128xf32>
    %42 = vector.broadcast %12 : vector<1x128xf32> to vector<2x128xf32>
    %43 = arith.mulf %41, %42 : vector<2x128xf32>
    %44 = math.tanh %43 : vector<2x128xf32>
    %45 = vector.broadcast %12 : vector<1x128xf32> to vector<2x128xf32>
    %46 = arith.mulf %44, %45 : vector<2x128xf32>
    %47 = vector.broadcast %15 : vector<1x128xf32> to vector<2x128xf32>
    %48 = arith.addf %46, %47 : vector<2x128xf32>
    %49 = vector.extract_strided_slice %48 {offsets = [0, 0], sizes = [2, 32], strides = [1, 1]} : vector<2x128xf32> to vector<2x32xf32>
    %50 = vector.extract_strided_slice %48 {offsets = [0, 32], sizes = [2, 32], strides = [1, 1]} : vector<2x128xf32> to vector<2x32xf32>
    %51 = vector.extract_strided_slice %48 {offsets = [0, 64], sizes = [2, 32], strides = [1, 1]} : vector<2x128xf32> to vector<2x32xf32>
    %52 = vector.extract_strided_slice %48 {offsets = [0, 96], sizes = [2, 32], strides = [1, 1]} : vector<2x128xf32> to vector<2x32xf32>
    %53 = arith.mulf %50, %35 : vector<2x32xf32>
    %54 = arith.mulf %49, %52 : vector<2x32xf32>
    %55 = arith.addf %53, %54 : vector<2x32xf32>
    %56 = math.tanh %55 : vector<2x32xf32>
    %57 = arith.mulf %51, %56 : vector<2x32xf32>
    %58 = vector.extract_strided_slice %5 {offsets = [4, 0], sizes = [2, 128], strides = [1, 1]} : vector<16x128xf32> to vector<2x128xf32>
    %59 = arith.truncf %57 : vector<2x32xf32> to vector<2x32xbf16>
    %cst_15 = arith.constant dense<0.000000e+00> : vector<2x128xf32>
    %60 = tpu.matmul %59, %6, %cst_15 {dimension_numbers = #tpu.dot_dimension_numbers<[1], [0], [0], [1], [0, 0, 1, 1], [], []>} : vector<2x32xbf16>, vector<32x128xbf16>, vector<2x128xf32> -> vector<2x128xf32>
    %61 = arith.addf %58, %60 : vector<2x128xf32>
    %62 = vector.broadcast %12 : vector<1x128xf32> to vector<2x128xf32>
    %63 = arith.mulf %61, %62 : vector<2x128xf32>
    %64 = math.tanh %63 : vector<2x128xf32>
    %65 = vector.broadcast %12 : vector<1x128xf32> to vector<2x128xf32>
    %66 = arith.mulf %64, %65 : vector<2x128xf32>
    %67 = vector.broadcast %15 : vector<1x128xf32> to vector<2x128xf32>
    %68 = arith.addf %66, %67 : vector<2x128xf32>
    %69 = vector.extract_strided_slice %68 {offsets = [0, 0], sizes = [2, 32], strides = [1, 1]} : vector<2x128xf32> to vector<2x32xf32>
    %70 = vector.extract_strided_slice %68 {offsets = [0, 32], sizes = [2, 32], strides = [1, 1]} : vector<2x128xf32> to vector<2x32xf32>
    %71 = vector.extract_strided_slice %68 {offsets = [0, 64], sizes = [2, 32], strides = [1, 1]} : vector<2x128xf32> to vector<2x32xf32>
    %72 = vector.extract_strided_slice %68 {offsets = [0, 96], sizes = [2, 32], strides = [1, 1]} : vector<2x128xf32> to vector<2x32xf32>
    %73 = arith.mulf %70, %55 : vector<2x32xf32>
    %74 = arith.mulf %69, %72 : vector<2x32xf32>
    %75 = arith.addf %73, %74 : vector<2x32xf32>
    %76 = math.tanh %75 : vector<2x32xf32>
    %77 = arith.mulf %71, %76 : vector<2x32xf32>
    %78 = vector.extract_strided_slice %5 {offsets = [6, 0], sizes = [2, 128], strides = [1, 1]} : vector<16x128xf32> to vector<2x128xf32>
    %79 = arith.truncf %77 : vector<2x32xf32> to vector<2x32xbf16>
    %cst_16 = arith.constant dense<0.000000e+00> : vector<2x128xf32>
    %80 = tpu.matmul %79, %6, %cst_16 {dimension_numbers = #tpu.dot_dimension_numbers<[1], [0], [0], [1], [0, 0, 1, 1], [], []>} : vector<2x32xbf16>, vector<32x128xbf16>, vector<2x128xf32> -> vector<2x128xf32>
    %81 = arith.addf %78, %80 : vector<2x128xf32>
    %82 = vector.broadcast %12 : vector<1x128xf32> to vector<2x128xf32>
    %83 = arith.mulf %81, %82 : vector<2x128xf32>
    %84 = math.tanh %83 : vector<2x128xf32>
    %85 = vector.broadcast %12 : vector<1x128xf32> to vector<2x128xf32>
    %86 = arith.mulf %84, %85 : vector<2x128xf32>
    %87 = vector.broadcast %15 : vector<1x128xf32> to vector<2x128xf32>
    %88 = arith.addf %86, %87 : vector<2x128xf32>
    %89 = vector.extract_strided_slice %88 {offsets = [0, 0], sizes = [2, 32], strides = [1, 1]} : vector<2x128xf32> to vector<2x32xf32>
    %90 = vector.extract_strided_slice %88 {offsets = [0, 32], sizes = [2, 32], strides = [1, 1]} : vector<2x128xf32> to vector<2x32xf32>
    %91 = vector.extract_strided_slice %88 {offsets = [0, 64], sizes = [2, 32], strides = [1, 1]} : vector<2x128xf32> to vector<2x32xf32>
    %92 = vector.extract_strided_slice %88 {offsets = [0, 96], sizes = [2, 32], strides = [1, 1]} : vector<2x128xf32> to vector<2x32xf32>
    %93 = arith.mulf %90, %75 : vector<2x32xf32>
    %94 = arith.mulf %89, %92 : vector<2x32xf32>
    %95 = arith.addf %93, %94 : vector<2x32xf32>
    %96 = math.tanh %95 : vector<2x32xf32>
    %97 = arith.mulf %91, %96 : vector<2x32xf32>
    %98 = vector.extract_strided_slice %5 {offsets = [8, 0], sizes = [2, 128], strides = [1, 1]} : vector<16x128xf32> to vector<2x128xf32>
    %99 = arith.truncf %97 : vector<2x32xf32> to vector<2x32xbf16>
    %cst_17 = arith.constant dense<0.000000e+00> : vector<2x128xf32>
    %100 = tpu.matmul %99, %6, %cst_17 {dimension_numbers = #tpu.dot_dimension_numbers<[1], [0], [0], [1], [0, 0, 1, 1], [], []>} : vector<2x32xbf16>, vector<32x128xbf16>, vector<2x128xf32> -> vector<2x128xf32>
    %101 = arith.addf %98, %100 : vector<2x128xf32>
    %102 = vector.broadcast %12 : vector<1x128xf32> to vector<2x128xf32>
    %103 = arith.mulf %101, %102 : vector<2x128xf32>
    %104 = math.tanh %103 : vector<2x128xf32>
    %105 = vector.broadcast %12 : vector<1x128xf32> to vector<2x128xf32>
    %106 = arith.mulf %104, %105 : vector<2x128xf32>
    %107 = vector.broadcast %15 : vector<1x128xf32> to vector<2x128xf32>
    %108 = arith.addf %106, %107 : vector<2x128xf32>
    %109 = vector.extract_strided_slice %108 {offsets = [0, 0], sizes = [2, 32], strides = [1, 1]} : vector<2x128xf32> to vector<2x32xf32>
    %110 = vector.extract_strided_slice %108 {offsets = [0, 32], sizes = [2, 32], strides = [1, 1]} : vector<2x128xf32> to vector<2x32xf32>
    %111 = vector.extract_strided_slice %108 {offsets = [0, 64], sizes = [2, 32], strides = [1, 1]} : vector<2x128xf32> to vector<2x32xf32>
    %112 = vector.extract_strided_slice %108 {offsets = [0, 96], sizes = [2, 32], strides = [1, 1]} : vector<2x128xf32> to vector<2x32xf32>
    %113 = arith.mulf %110, %95 : vector<2x32xf32>
    %114 = arith.mulf %109, %112 : vector<2x32xf32>
    %115 = arith.addf %113, %114 : vector<2x32xf32>
    %116 = math.tanh %115 : vector<2x32xf32>
    %117 = arith.mulf %111, %116 : vector<2x32xf32>
    %118 = vector.extract_strided_slice %5 {offsets = [10, 0], sizes = [2, 128], strides = [1, 1]} : vector<16x128xf32> to vector<2x128xf32>
    %119 = arith.truncf %117 : vector<2x32xf32> to vector<2x32xbf16>
    %cst_18 = arith.constant dense<0.000000e+00> : vector<2x128xf32>
    %120 = tpu.matmul %119, %6, %cst_18 {dimension_numbers = #tpu.dot_dimension_numbers<[1], [0], [0], [1], [0, 0, 1, 1], [], []>} : vector<2x32xbf16>, vector<32x128xbf16>, vector<2x128xf32> -> vector<2x128xf32>
    %121 = arith.addf %118, %120 : vector<2x128xf32>
    %122 = vector.broadcast %12 : vector<1x128xf32> to vector<2x128xf32>
    %123 = arith.mulf %121, %122 : vector<2x128xf32>
    %124 = math.tanh %123 : vector<2x128xf32>
    %125 = vector.broadcast %12 : vector<1x128xf32> to vector<2x128xf32>
    %126 = arith.mulf %124, %125 : vector<2x128xf32>
    %127 = vector.broadcast %15 : vector<1x128xf32> to vector<2x128xf32>
    %128 = arith.addf %126, %127 : vector<2x128xf32>
    %129 = vector.extract_strided_slice %128 {offsets = [0, 0], sizes = [2, 32], strides = [1, 1]} : vector<2x128xf32> to vector<2x32xf32>
    %130 = vector.extract_strided_slice %128 {offsets = [0, 32], sizes = [2, 32], strides = [1, 1]} : vector<2x128xf32> to vector<2x32xf32>
    %131 = vector.extract_strided_slice %128 {offsets = [0, 64], sizes = [2, 32], strides = [1, 1]} : vector<2x128xf32> to vector<2x32xf32>
    %132 = vector.extract_strided_slice %128 {offsets = [0, 96], sizes = [2, 32], strides = [1, 1]} : vector<2x128xf32> to vector<2x32xf32>
    %133 = arith.mulf %130, %115 : vector<2x32xf32>
    %134 = arith.mulf %129, %132 : vector<2x32xf32>
    %135 = arith.addf %133, %134 : vector<2x32xf32>
    %136 = math.tanh %135 : vector<2x32xf32>
    %137 = arith.mulf %131, %136 : vector<2x32xf32>
    %138 = vector.extract_strided_slice %5 {offsets = [12, 0], sizes = [2, 128], strides = [1, 1]} : vector<16x128xf32> to vector<2x128xf32>
    %139 = arith.truncf %137 : vector<2x32xf32> to vector<2x32xbf16>
    %cst_19 = arith.constant dense<0.000000e+00> : vector<2x128xf32>
    %140 = tpu.matmul %139, %6, %cst_19 {dimension_numbers = #tpu.dot_dimension_numbers<[1], [0], [0], [1], [0, 0, 1, 1], [], []>} : vector<2x32xbf16>, vector<32x128xbf16>, vector<2x128xf32> -> vector<2x128xf32>
    %141 = arith.addf %138, %140 : vector<2x128xf32>
    %142 = vector.broadcast %12 : vector<1x128xf32> to vector<2x128xf32>
    %143 = arith.mulf %141, %142 : vector<2x128xf32>
    %144 = math.tanh %143 : vector<2x128xf32>
    %145 = vector.broadcast %12 : vector<1x128xf32> to vector<2x128xf32>
    %146 = arith.mulf %144, %145 : vector<2x128xf32>
    %147 = vector.broadcast %15 : vector<1x128xf32> to vector<2x128xf32>
    %148 = arith.addf %146, %147 : vector<2x128xf32>
    %149 = vector.extract_strided_slice %148 {offsets = [0, 0], sizes = [2, 32], strides = [1, 1]} : vector<2x128xf32> to vector<2x32xf32>
    %150 = vector.extract_strided_slice %148 {offsets = [0, 32], sizes = [2, 32], strides = [1, 1]} : vector<2x128xf32> to vector<2x32xf32>
    %151 = vector.extract_strided_slice %148 {offsets = [0, 64], sizes = [2, 32], strides = [1, 1]} : vector<2x128xf32> to vector<2x32xf32>
    %152 = vector.extract_strided_slice %148 {offsets = [0, 96], sizes = [2, 32], strides = [1, 1]} : vector<2x128xf32> to vector<2x32xf32>
    %153 = arith.mulf %150, %135 : vector<2x32xf32>
    %154 = arith.mulf %149, %152 : vector<2x32xf32>
    %155 = arith.addf %153, %154 : vector<2x32xf32>
    %156 = math.tanh %155 : vector<2x32xf32>
    %157 = arith.mulf %151, %156 : vector<2x32xf32>
    %158 = vector.extract_strided_slice %5 {offsets = [14, 0], sizes = [2, 128], strides = [1, 1]} : vector<16x128xf32> to vector<2x128xf32>
    %159 = arith.truncf %157 : vector<2x32xf32> to vector<2x32xbf16>
    %cst_20 = arith.constant dense<0.000000e+00> : vector<2x128xf32>
    %160 = tpu.matmul %159, %6, %cst_20 {dimension_numbers = #tpu.dot_dimension_numbers<[1], [0], [0], [1], [0, 0, 1, 1], [], []>} : vector<2x32xbf16>, vector<32x128xbf16>, vector<2x128xf32> -> vector<2x128xf32>
    %161 = arith.addf %158, %160 : vector<2x128xf32>
    %162 = vector.broadcast %12 : vector<1x128xf32> to vector<2x128xf32>
    %163 = arith.mulf %161, %162 : vector<2x128xf32>
    %164 = math.tanh %163 : vector<2x128xf32>
    %165 = vector.broadcast %12 : vector<1x128xf32> to vector<2x128xf32>
    %166 = arith.mulf %164, %165 : vector<2x128xf32>
    %167 = vector.broadcast %15 : vector<1x128xf32> to vector<2x128xf32>
    %168 = arith.addf %166, %167 : vector<2x128xf32>
    %169 = vector.extract_strided_slice %168 {offsets = [0, 0], sizes = [2, 32], strides = [1, 1]} : vector<2x128xf32> to vector<2x32xf32>
    %170 = vector.extract_strided_slice %168 {offsets = [0, 32], sizes = [2, 32], strides = [1, 1]} : vector<2x128xf32> to vector<2x32xf32>
    %171 = vector.extract_strided_slice %168 {offsets = [0, 64], sizes = [2, 32], strides = [1, 1]} : vector<2x128xf32> to vector<2x32xf32>
    %172 = vector.extract_strided_slice %168 {offsets = [0, 96], sizes = [2, 32], strides = [1, 1]} : vector<2x128xf32> to vector<2x32xf32>
    %173 = arith.mulf %170, %155 : vector<2x32xf32>
    %174 = arith.mulf %169, %172 : vector<2x32xf32>
    %175 = arith.addf %173, %174 : vector<2x32xf32>
    %176 = math.tanh %175 : vector<2x32xf32>
    %177 = arith.mulf %171, %176 : vector<2x32xf32>
    %c0_21 = arith.constant 0 : index
    %c0_22 = arith.constant 0 : index
    %178 = vector.load %arg4[%c0_21, %c0_22] : memref<1x32xf32, #tpu.memory_space<vmem>>, vector<1x32xf32>
    %179 = vector.broadcast %178 : vector<1x32xf32> to vector<2x32xf32>
    %180 = arith.mulf %177, %179 : vector<2x32xf32>
    %cst_23 = arith.constant dense<0.000000e+00> : vector<2xf32>
    %181 = vector.multi_reduction <add>, %180, %cst_23 [1] : vector<2x32xf32> to vector<2xf32>
    %182 = vector.shape_cast %181 : vector<2xf32> to vector<2x1xf32>
    %c0_24 = arith.constant 0 : index
    %c0_25 = arith.constant 0 : index
    %183 = vector.load %arg5[%c0_24, %c0_25] : memref<1x1xf32, #tpu.memory_space<vmem>>, vector<1x1xf32>
    %184 = vector.broadcast %183 : vector<1x1xf32> to vector<2x1xf32>
    %185 = arith.addf %182, %184 : vector<2x1xf32>
    %c0_26 = arith.constant 0 : index
    %c0_27 = arith.constant 0 : index
    %186 = vector.load %arg6[%c0_26, %c0_27] : memref<2x1xf32, #tpu.memory_space<vmem>>, vector<2x1xf32>
    tpu.vector_store %arg6[%c0_26, %c0_27], %185 {strides = array<i32>} : memref<2x1xf32, #tpu.memory_space<vmem>>, vector<2x1xf32>,
    return
  }
}

</mosaic_0001>

<bundles_post_ra>
// kernel: tpu_custom_call.1
= control target key start
LH: loop header
LB: loop body
LE: loop exit
PB: predicated region body
PF: predicated region fallthrough
CT: control target
= control target key end

     0   :  { %vm45_vm0 = vcmask 1041408   ;;  %v887_v0 = vmov 0.0   ;;  %vm888_vm1 = vmmov 0   ;;  %vm41_vm2 = vcmask 31744   ;;  %s892_s28 = smov 64   ;;  %s1088_s1 = inlined_call_operand.vmem [shape: bf16[4,128], index: 1, kind: input, shape index: {}]   ;;  %s1089_s2 = inlined_call_operand.vmem [shape: bf16[32,128], index: 2, kind: input, shape index: {}]   ;;  %s1090_s0 = inlined_call_operand.vmem [shape: bf16[16,4], index: 0, kind: input, shape index: {}]   ;;  %s1091_s3 = inlined_call_operand.vmem [shape: f32[1,128], index: 3, kind: input, shape index: {}]   ;;  %s1092_s4 = inlined_call_operand.vmem [shape: f32[1,32], index: 4, kind: input, shape index: {}]   ;;  %s1093_s5 = inlined_call_operand.<no memory space> [shape: f32[1,1], index: 5, kind: input, shape index: {}]   ;;  %s1094_s6 = inlined_call_operand.vmem [shape: f32[2,1], index: 6, kind: output, shape index: {}]  }
   0x1   :  { %776 = vmatprep.subr.bf16.mxu0 %v887_v0  ;;  %v28_v1 = vld [vmem:[%s1088_s1] sm:$0x3]  ;;  %782 = vmatprep.subr.bf16.mxu1 %v887_v0  ;;  %v949_v5 = vld [vmem:[%s1089_s2 + $0x8] sm:$0xff]   ;;  %v889_v6 = vmov 0   ;;  %v94_v7 = vlaneseq  ;;  %v890_v16 = vmov 1.0   ;;  %vm111_vm4 = vcmask 261120  }
   0x2   :  { %v47_v2 = vsel %vm45_vm0, %v28_v1, 0  ;;  %v936_v3 = vld [vmem:[%s1089_s2] sm:$0xff]   ;;  %778 = vmatprep.mubr.msk.bf16.mxu0 %vm888_vm1, %v887_v0  ;;  %786 = vmatprep.mubr.msk.bf16.mxu1 %vm888_vm1, %v887_v0  ;;  %vm718_vm5 = vcmask 261126   ;;  %vm730_vm6 = vcmask 7174  }
   0x3   :  { %777 = vmatpush3.bf16.msra.mxu0 %v47_v2  ;;  %v853_v4 = vld [vmem:[%s1090_s0] sm:$0xff]   ;;  %783 = vmatpush3.bf16.msra.mxu1 %v936_v3  ;;  %v95_v8 = vand.u32 127, %v94_v7 }
   0x4   :  { %790 = vmatprep.subr.bf16.mxu0 %v887_v0  ;;  %784 = vmatprep.subr.bf16.mxu1 %v887_v0  ;;  %v736_v9 = vld [vmem:[%s1091_s3] ss:$0 sm:$0xff]  ;;  %s891_s3 = smov 32  }
   0x5   :  { %vm96_vm3 = vcmp.lt.s32.totalorder %v95_v8, 96 }
   0x6   :  { %779 = vmatmul.mubr.msk.bf16.vlgmr.msra.gmra.mrb[0].mxu0 %vm41_vm2, %v853_v4  ;;  %v974_v17 = vsel %vm96_vm3, 0.5, %v890_v16  ;;  %v979_v25 = vsel %vm96_vm3, 0.5, %v887_v0 }
   0x7   :  { %791 = vmatpush3.bf16.msra.mxu0 %v936_v3  ;;  %794 = vmatprep.mubr.msk.bf16.mxu0 %vm888_vm1, %v887_v0 }
   0x8   :  { %785 = vmatpush3.bf16.msra.mxu1 %v949_v5  ;;  %792 = vmatprep.subr.bf16.mxu0 %v887_v0 }
   0x9   :  { %798 = vmatprep.subr.bf16.mxu1 %v887_v0 }
   0xb   :  { %787 = vmatmul.mubr.bf16.vlgmr.msra.gmra.mrb[0].mxu1 %v889_v6  ;;  %793 = vmatpush3.bf16.msra.mxu0 %v949_v5 }
   0xc   :  { %799 = vmatpush3.bf16.msra.mxu1 %v936_v3  ;;  %802 = vmatprep.mubr.msk.bf16.mxu1 %vm888_vm1, %v887_v0 }
   0xd   :  { %800 = vmatprep.subr.bf16.mxu1 %v887_v0  ;;  %806 = vmatprep.subr.bf16.mxu0 %v887_v0 }
  0x10   :  { %801 = vmatpush3.bf16.msra.mxu1 %v949_v5 }
  0x11   :  { %814 = vmatprep.subr.bf16.mxu1 %v887_v0 }
  0xd9   :  { %v83_v10 = vpop.f32.mrb[0].mxu0 }
  0xda   :  { %v780_v11 = vpop.f32.mrb[1].mxu0  ;;  %v970_v12 = vadd.f32 %v736_v9, %v83_v10 }
  0xdb   :  { %v86_v13 = vpop.f32.mrb[2].mxu0 }
  0xdc   :  { %v972_v14 = vadd.f32 %v736_v9, %v86_v13  ;;  %v781_v15 = vpop.f32.mrb[3].mxu0 }
  0xde   :  { %v149_v18 = vpop.f32.mrb[0].mxu1 }
  0xdf   :  { %v155_v19 = vadd.f32 %v149_v18, %v970_v12  ;;  %v788_v20 = vpop.f32.mrb[1].mxu1 }
  0xe0   :  { %v152_v21 = vpop.f32.mrb[2].mxu1 }
  0xe1   :  { %v156_v22 = vmul.f32 %v155_v19, %v974_v17  ;;  %v789_v23 = vpop.f32.mrb[3].mxu1 }
  0xe3   :  { %855 = vtanh.f32 %v156_v22 }
  0xed   :  { %v856_v24 = vpop.eup %855 }
  0xee   :  { %v158_v26 = vmul.f32 %v856_v24, %v974_v17 }
  0xf0   :  { %v159_v27 = vadd.f32 %v158_v26, %v979_v25 }
  0xf2   :  { %162 = vrot.lane.b32.xlu0 %v159_v27, %s891_s3  ;;  %v160_v30 = vmul.f32 0.0, %v159_v27 }
 0x164   :  { %v163_v28 = vpop.permute.xlu0 %162 }
 0x165   :  { %v165_v29 = vmul.f32 %v163_v28, %v159_v27 }
 0x167   :  { %167 = vrot.lane.b32.xlu0 %v165_v29, %s891_s3 }
 0x1d9   :  { %v168_v31 = vpop.permute.xlu0 %167 }
 0x1da   :  { %v170_v32 = vadd.f32 %v168_v31, %v160_v30 }
 0x1dc   :  { %857 = vtanh.f32 %v170_v32  ;;  %v233_v50 = vrot.slane %v170_v32, 6 }
 0x1e6   :  { %v858_v33 = vpop.eup %857 }
 0x1e7   :  { %173 = vrot.lane.b32.xlu1 %v858_v33, %s891_s3 }
 0x259   :  { %v174_v34 = vpop.permute.xlu1 %173 }
 0x25a   :  { %v176_v35 = vmul.f32 %v174_v34, %v159_v27 }
 0x25c   :  { %v177_v36 = vpack.c.bf16 %v176_v35, %v176_v35 }
 0x25e   :  { %179 = vrot.lane.b32.xlu1 %v177_v36, %s892_s28 }
 0x2d0   :  { %v180_v37 = vpop.permute.xlu1 %179 }
 0x2d1   :  { %795 = vmatmul.mubr.msk.bf16.vlgmr.msra.gmra.mrb[4].mxu0 %vm111_vm4, %v180_v37 }
 0x2d2   :  { %807 = vmatpush3.bf16.msra.mxu0 %v936_v3  ;;  %810 = vmatprep.mubr.msk.bf16.mxu0 %vm888_vm1, %v887_v0 }
 0x2d3   :  { %808 = vmatprep.subr.bf16.mxu0 %v887_v0 }
 0x2d6   :  { %809 = vmatpush3.bf16.msra.mxu0 %v949_v5 }
 0x2d7   :  { %822 = vmatprep.subr.bf16.mxu0 %v887_v0 }
 0x3a4   :  { %v218_v38 = vpop.f32.mrb[4].mxu0 }
 0x3a5   :  { %v225_v39 = vrot.slane %v218_v38, 6  ;;  %v796_v40 = vpop.f32.mrb[5].mxu0 }
 0x3a6   :  { %v221_v41 = vpop.f32.mrb[6].mxu0 }
 0x3a7   :  { %v227_v42 = vadd.f32 %v225_v39, %v970_v12  ;;  %v797_v43 = vpop.f32.mrb[7].mxu0 }
 0x3a9   :  { %v228_v44 = vmul.f32 %v227_v42, %v974_v17 }
 0x3ab   :  { %859 = vtanh.f32 %v228_v44 }
 0x3b5   :  { %v860_v45 = vpop.eup %859 }
 0x3b6   :  { %v230_v46 = vmul.f32 %v860_v45, %v974_v17 }
 0x3b8   :  { %v231_v47 = vadd.f32 %v230_v46, %v979_v25 }
 0x3ba   :  { %237 = vrot.lane.b32.xlu0 %v231_v47, %s891_s3  ;;  %v235_v51 = vmul.f32 %v233_v50, %v231_v47 }
 0x42c   :  { %v238_v48 = vpop.permute.xlu0 %237 }
 0x42d   :  { %v240_v49 = vmul.f32 %v238_v48, %v231_v47 }
 0x42f   :  { %242 = vrot.lane.b32.xlu1 %v240_v49, %s891_s3 }
 0x4a1   :  { %v243_v52 = vpop.permute.xlu1 %242 }
 0x4a2   :  { %v245_v53 = vadd.f32 %v243_v52, %v235_v51 }
 0x4a4   :  { %861 = vtanh.f32 %v245_v53  ;;  %v309_v11 = vrot.slane %v245_v53, 6 }
 0x4ae   :  { %v862_v54 = vpop.eup %861 }
 0x4af   :  { %248 = vrot.lane.b32.xlu0 %v862_v54, %s891_s3 }
 0x521   :  { %v249_v55 = vpop.permute.xlu0 %248 }
 0x522   :  { %v251_v56 = vmul.f32 %v249_v55, %v231_v47 }
 0x524   :  { %v252_v57 = vpack.c.bf16 %v251_v56, %v251_v56 }
 0x526   :  { %v254_v58 = vrot.slane %v252_v57, 1 }
 0x528   :  { %255 = vrot.lane.b32.xlu1 %v254_v58, %s892_s28 }
 0x59a   :  { %v256_v59 = vpop.permute.xlu1 %255 }
 0x59b   :  { %803 = vmatmul.mubr.msk.bf16.vlgmr.msra.gmra.mrb[4].mxu1 %vm111_vm4, %v256_v59 }
 0x59c   :  { %815 = vmatpush3.bf16.msra.mxu1 %v936_v3  ;;  %818 = vmatprep.mubr.msk.bf16.mxu1 %vm888_vm1, %v887_v0 }
 0x59d   :  { %816 = vmatprep.subr.bf16.mxu1 %v887_v0 }
 0x5a0   :  { %817 = vmatpush3.bf16.msra.mxu1 %v949_v5 }
 0x5a1   :  { %830 = vmatprep.subr.bf16.mxu1 %v887_v0 }
 0x66e   :  { %v294_v60 = vpop.f32.mrb[4].mxu1 }
 0x66f   :  { %v301_v61 = vrot.slane %v294_v60, 4  ;;  %v804_v62 = vpop.f32.mrb[5].mxu1 }
 0x670   :  { %v297_v63 = vpop.f32.mrb[6].mxu1 }
 0x671   :  { %v303_v1 = vadd.f32 %v301_v61, %v970_v12  ;;  %v805_v2 = vpop.f32.mrb[7].mxu1 }
 0x673   :  { %v304_v4 = vmul.f32 %v303_v1, %v974_v17 }
 0x675   :  { %863 = vtanh.f32 %v304_v4 }
 0x67f   :  { %v864_v6 = vpop.eup %863 }
 0x680   :  { %v306_v7 = vmul.f32 %v864_v6, %v974_v17 }
 0x682   :  { %v307_v8 = vadd.f32 %v306_v7, %v979_v25 }
 0x684   :  { %313 = vrot.lane.b32.xlu0 %v307_v8, %s891_s3  ;;  %v311_v13 = vmul.f32 %v309_v11, %v307_v8 }
 0x6f6   :  { %v314_v9 = vpop.permute.xlu0 %313 }
 0x6f7   :  { %v316_v10 = vmul.f32 %v314_v9, %v307_v8 }
 0x6f9   :  { %318 = vrot.lane.b32.xlu1 %v316_v10, %s891_s3 }
 0x76b   :  { %v319_v15 = vpop.permute.xlu1 %318 }
 0x76c   :  { %v321_v16 = vadd.f32 %v319_v15, %v311_v13 }
 0x76e   :  { %865 = vtanh.f32 %v321_v16  ;;  %v385_v37 = vrot.slane %v321_v16, 6 }
 0x778   :  { %v866_v18 = vpop.eup %865 }
 0x779   :  { %324 = vrot.lane.b32.xlu0 %v866_v18, %s891_s3 }
 0x7eb   :  { %v325_v19 = vpop.permute.xlu0 %324 }
 0x7ec   :  { %v327_v20 = vmul.f32 %v325_v19, %v307_v8 }
 0x7ee   :  { %v328_v21 = vpack.c.bf16 %v327_v20, %v327_v20 }
 0x7f0   :  { %v330_v22 = vrot.slane %v328_v21, 2 }
 0x7f2   :  { %331 = vrot.lane.b32.xlu1 %v330_v22, %s892_s28 }
 0x864   :  { %v332_v23 = vpop.permute.xlu1 %331 }
 0x865   :  { %811 = vmatmul.mubr.msk.bf16.vlgmr.msra.gmra.mrb[8].mxu0 %vm111_vm4, %v332_v23 }
 0x866   :  { %823 = vmatpush3.bf16.msra.mxu0 %v936_v3  ;;  %826 = vmatprep.mubr.msk.bf16.mxu0 %vm888_vm1, %v887_v0 }
 0x867   :  { %824 = vmatprep.subr.bf16.mxu0 %v887_v0 }
 0x86a   :  { %825 = vmatpush3.bf16.msra.mxu0 %v949_v5 }
 0x86b   :  { %838 = vmatprep.subr.bf16.mxu0 %v887_v0 }
 0x938   :  { %v370_v24 = vpop.f32.mrb[8].mxu0 }
 0x939   :  { %v377_v26 = vrot.slane %v370_v24, 2  ;;  %v812_v27 = vpop.f32.mrb[9].mxu0 }
 0x93a   :  { %v373_v28 = vpop.f32.mrb[10].mxu0 }
 0x93b   :  { %v379_v29 = vadd.f32 %v377_v26, %v970_v12  ;;  %v813_v30 = vpop.f32.mrb[11].mxu0 }
 0x93d   :  { %v380_v31 = vmul.f32 %v379_v29, %v974_v17 }
 0x93f   :  { %867 = vtanh.f32 %v380_v31 }
 0x949   :  { %v868_v32 = vpop.eup %867 }
 0x94a   :  { %v382_v33 = vmul.f32 %v868_v32, %v974_v17 }
 0x94c   :  { %v383_v34 = vadd.f32 %v382_v33, %v979_v25 }
 0x94e   :  { %389 = vrot.lane.b32.xlu0 %v383_v34, %s891_s3  ;;  %v387_v38 = vmul.f32 %v385_v37, %v383_v34 }
 0x9c0   :  { %v390_v35 = vpop.permute.xlu0 %389 }
 0x9c1   :  { %v392_v36 = vmul.f32 %v390_v35, %v383_v34 }
 0x9c3   :  { %394 = vrot.lane.b32.xlu1 %v392_v36, %s891_s3 }
 0xa35   :  { %v395_v39 = vpop.permute.xlu1 %394 }
 0xa36   :  { %v397_v40 = vadd.f32 %v395_v39, %v387_v38 }
 0xa38   :  { %869 = vtanh.f32 %v397_v40  ;;  %v458_v57 = vrot.slane %v397_v40, 6 }
 0xa42   :  { %v870_v12 = vpop.eup %869 }
 0xa43   :  { %400 = vrot.lane.b32.xlu0 %v870_v12, %s891_s3 }
 0xab5   :  { %v401_v41 = vpop.permute.xlu0 %400 }
 0xab6   :  { %v403_v42 = vmul.f32 %v401_v41, %v383_v34 }
 0xab8   :  { %v404_v43 = vpack.c.bf16 %v403_v42, %v403_v42 }
 0xaba   :  { %v406_v44 = vrot.slane %v404_v43, 3 }
 0xabc   :  { %407 = vrot.lane.b32.xlu1 %v406_v44, %s892_s28 }
 0xb2e   :  { %v408_v45 = vpop.permute.xlu1 %407 }
 0xb2f   :  { %819 = vmatmul.mubr.msk.bf16.vlgmr.msra.gmra.mrb[8].mxu1 %vm111_vm4, %v408_v45 }
 0xb30   :  { %831 = vmatpush3.bf16.msra.mxu1 %v936_v3  ;;  %834 = vmatprep.mubr.msk.bf16.mxu1 %vm888_vm1, %v887_v0 }
 0xb31   :  { %832 = vmatprep.subr.bf16.mxu1 %v887_v0 }
 0xb34   :  { %833 = vmatpush3.bf16.msra.mxu1 %v949_v5 }
 0xc02   :  { %v446_v46 = vpop.f32.mrb[8].mxu1 }
 0xc03   :  { %v452_v47 = vadd.f32 %v446_v46, %v972_v14  ;;  %v820_v48 = vpop.f32.mrb[9].mxu1 }
 0xc04   :  { %v449_v49 = vpop.f32.mrb[10].mxu1 }
 0xc05   :  { %v453_v50 = vmul.f32 %v452_v47, %v974_v17  ;;  %v821_v51 = vpop.f32.mrb[11].mxu1 }
 0xc07   :  { %871 = vtanh.f32 %v453_v50 }
 0xc11   :  { %v872_v52 = vpop.eup %871 }
 0xc12   :  { %v455_v53 = vmul.f32 %v872_v52, %v974_v17 }
 0xc14   :  { %v456_v54 = vadd.f32 %v455_v53, %v979_v25 }
 0xc16   :  { %462 = vrot.lane.b32.xlu0 %v456_v54, %s891_s3  ;;  %v460_v58 = vmul.f32 %v458_v57, %v456_v54 }
 0xc88   :  { %v463_v55 = vpop.permute.xlu0 %462 }
 0xc89   :  { %v465_v56 = vmul.f32 %v463_v55, %v456_v54 }
 0xc8b   :  { %467 = vrot.lane.b32.xlu1 %v465_v56, %s891_s3 }
 0xcfd   :  { %v468_v59 = vpop.permute.xlu1 %467 }
 0xcfe   :  { %v470_v60 = vadd.f32 %v468_v59, %v460_v58 }
 0xd00   :  { %873 = vtanh.f32 %v470_v60 }
 0xd0a   :  { %v874_v61 = vpop.eup %873 }
 0xd0b   :  { %473 = vrot.lane.b32.xlu0 %v874_v61, %s891_s3  ;;  %v748_v61 = vld [vmem:[%s1092_s4] ss:$0 sm:$0xff] }
 0xd7d   :  { %v474_v62 = vpop.permute.xlu0 %473 }
 0xd7e   :  { %v476_v63 = vmul.f32 %v474_v62, %v456_v54 }
 0xd80   :  { %v477_v1 = vpack.c.bf16 %v476_v63, %v476_v63 }
 0xd82   :  { %479 = vrot.lane.b32.xlu1 %v477_v1, %s892_s28 }
 0xdf4   :  { %v480_v2 = vpop.permute.xlu1 %479 }
 0xdf5   :  { %827 = vmatmul.mubr.msk.bf16.vlgmr.msra.gmra.mrb[12].mxu0 %vm111_vm4, %v480_v2 }
 0xdf6   :  { %839 = vmatpush3.bf16.msra.mxu0 %v936_v3  ;;  %842 = vmatprep.mubr.msk.bf16.mxu0 %vm888_vm1, %v887_v0 }
 0xdf7   :  { %840 = vmatprep.subr.bf16.mxu0 %v887_v0 }
 0xdfa   :  { %841 = vmatpush3.bf16.msra.mxu0 %v949_v5  ;;  %v533_v5 = vrot.slane %v470_v60, 6 }
 0xec8   :  { %v518_v4 = vpop.f32.mrb[12].mxu0 }
 0xec9   :  { %v525_v6 = vrot.slane %v518_v4, 6  ;;  %v828_v7 = vpop.f32.mrb[13].mxu0 }
 0xeca   :  { %v521_v8 = vpop.f32.mrb[14].mxu0 }
 0xecb   :  { %v527_v9 = vadd.f32 %v525_v6, %v972_v14  ;;  %v829_v10 = vpop.f32.mrb[15].mxu0 }
 0xecd   :  { %v528_v11 = vmul.f32 %v527_v9, %v974_v17 }
 0xecf   :  { %875 = vtanh.f32 %v528_v11 }
 0xed9   :  { %v876_v13 = vpop.eup %875 }
 0xeda   :  { %v530_v3 = vmul.f32 %v876_v13, %v974_v17 }
 0xedc   :  { %v531_v15 = vadd.f32 %v530_v3, %v979_v25 }
 0xede   :  { %537 = vrot.lane.b32.xlu0 %v531_v15, %s891_s3  ;;  %v535_v18 = vmul.f32 %v533_v5, %v531_v15 }
 0xf50   :  { %v538_v0 = vpop.permute.xlu0 %537 }
 0xf51   :  { %v540_v16 = vmul.f32 %v538_v0, %v531_v15 }
 0xf53   :  { %542 = vrot.lane.b32.xlu1 %v540_v16, %s891_s3 }
 0xfc5   :  { %v543_v19 = vpop.permute.xlu1 %542 }
 0xfc6   :  { %v545_v20 = vadd.f32 %v543_v19, %v535_v18 }
 0xfc8   :  { %877 = vtanh.f32 %v545_v20  ;;  %v609_v40 = vrot.slane %v545_v20, 6 }
 0xfd2   :  { %v878_v21 = vpop.eup %877 }
 0xfd3   :  { %548 = vrot.lane.b32.xlu0 %v878_v21, %s891_s3 }
0x1045   :  { %v549_v22 = vpop.permute.xlu0 %548 }
0x1046   :  { %v551_v23 = vmul.f32 %v549_v22, %v531_v15 }
0x1048   :  { %v552_v24 = vpack.c.bf16 %v551_v23, %v551_v23 }
0x104a   :  { %v554_v26 = vrot.slane %v552_v24, 1 }
0x104c   :  { %555 = vrot.lane.b32.xlu1 %v554_v26, %s892_s28 }
0x10be   :  { %v556_v27 = vpop.permute.xlu1 %555 }
0x10bf   :  { %835 = vmatmul.mubr.msk.bf16.vlgmr.msra.gmra.mrb[12].mxu1 %vm111_vm4, %v556_v27 }
0x1192   :  { %v594_v28 = vpop.f32.mrb[12].mxu1 }
0x1193   :  { %v601_v29 = vrot.slane %v594_v28, 4  ;;  %v836_v30 = vpop.f32.mrb[13].mxu1 }
0x1194   :  { %v597_v31 = vpop.f32.mrb[14].mxu1 }
0x1195   :  { %v603_v32 = vadd.f32 %v601_v29, %v972_v14  ;;  %v837_v33 = vpop.f32.mrb[15].mxu1 }
0x1197   :  { %v604_v34 = vmul.f32 %v603_v32, %v974_v17 }
0x1199   :  { %879 = vtanh.f32 %v604_v34 }
0x11a3   :  { %v880_v35 = vpop.eup %879 }
0x11a4   :  { %v606_v36 = vmul.f32 %v880_v35, %v974_v17 }
0x11a6   :  { %v607_v37 = vadd.f32 %v606_v36, %v979_v25 }
0x11a8   :  { %613 = vrot.lane.b32.xlu0 %v607_v37, %s891_s3  ;;  %v611_v12 = vmul.f32 %v609_v40, %v607_v37 }
0x121a   :  { %v614_v38 = vpop.permute.xlu0 %613 }
0x121b   :  { %v616_v39 = vmul.f32 %v614_v38, %v607_v37 }
0x121d   :  { %618 = vrot.lane.b32.xlu1 %v616_v39, %s891_s3 }
0x128f   :  { %v619_v41 = vpop.permute.xlu1 %618 }
0x1290   :  { %v621_v42 = vadd.f32 %v619_v41, %v611_v12 }
0x1292   :  { %881 = vtanh.f32 %v621_v42 }
0x129c   :  { %v882_v43 = vpop.eup %881 }
0x129d   :  { %624 = vrot.lane.b32.xlu0 %v882_v43, %s891_s3 }
0x130f   :  { %v625_v44 = vpop.permute.xlu0 %624 }
0x1310   :  { %v627_v45 = vmul.f32 %v625_v44, %v607_v37 }
0x1312   :  { %v628_v46 = vpack.c.bf16 %v627_v45, %v627_v45 }
0x1314   :  { %v630_v47 = vrot.slane %v628_v46, 2 }
0x1316   :  { %631 = vrot.lane.b32.xlu1 %v630_v47, %s892_s28 }
0x1388   :  { %v632_v48 = vpop.permute.xlu1 %631 }
0x1389   :  { %843 = vmatmul.mubr.msk.bf16.vlgmr.msra.gmra.mrb[16].mxu0 %vm111_vm4, %v632_v48 }
0x145c   :  { %v670_v49 = vpop.f32.mrb[16].mxu0 }
0x145d   :  { %v677_v50 = vrot.slane %v670_v49, 2  ;;  %v844_v51 = vpop.f32.mrb[17].mxu0 }
0x145e   :  { %v673_v52 = vpop.f32.mrb[18].mxu0 }
0x145f   :  { %v679_v53 = vadd.f32 %v677_v50, %v972_v14  ;;  %v845_v54 = vpop.f32.mrb[19].mxu0  ;;  %v685_v14 = vrot.slane %v621_v42, 6 }
0x1461   :  { %v680_v55 = vmul.f32 %v679_v53, %v974_v17 }
0x1463   :  { %883 = vtanh.f32 %v680_v55 }
0x146d   :  { %v884_v56 = vpop.eup %883 }
0x146e   :  { %v682_v57 = vmul.f32 %v884_v56, %v974_v17 }
0x1470   :  { %v683_v58 = vadd.f32 %v682_v57, %v979_v25  ;;  %v11_v25 = vstv %s1093_s5 }
0x1471   :  { %12 = vst [vmem:[#allocation2] sm:$0x1] %v11_v25 }
0x1472   :  { %689 = vrot.lane.b32.xlu0 %v683_v58, %s891_s3  ;;  %v687_v62 = vmul.f32 %v685_v14, %v683_v58 }
0x1478   :  { %v749_v10 = vld [vmem:[#allocation2] ss:$0 sm:$0xff] }
0x14e4   :  { %v690_v59 = vpop.permute.xlu0 %689 }
0x14e5   :  { %v692_v60 = vmul.f32 %v690_v59, %v683_v58 }
0x14e7   :  { %694 = vrot.lane.b32.xlu1 %v692_v60, %s891_s3 }
0x14eb   :  { %710 = vrot.lane.b32.xlu1 %v748_v61, %s892_s28 }
0x1559   :  { %v695_v63 = vpop.permute.xlu1 %694 }
0x155a   :  { %v697_v1 = vadd.f32 %v695_v63, %v687_v62 }
0x155c   :  { %885 = vtanh.f32 %v697_v1 }
0x155d   :  { %v711_v4 = vpop.permute.xlu1 %710 }
0x1566   :  { %v886_v17 = vpop.eup %885 }
0x1567   :  { %700 = vrot.lane.b32.xlu0 %v886_v17, %s891_s3 }
0x15d9   :  { %v701_v2 = vpop.permute.xlu0 %700 }
0x15da   :  { %v703_v6 = vmul.f32 %v701_v2, %v683_v58 }
0x15dc   :  { %v713_v7 = vmul.f32 %v711_v4, %v703_v6 }
0x15de   :  { %715 = vrot.lane.b32.xlu0 %v713_v7, %s892_s28 }
0x1650   :  { %v716_v8 = vpop.permute.xlu0 %715 }
0x1651   :  { %v719_v9 = vsel %vm718_vm5, %v716_v8, 0.0 }
0x1652   :  { %720 = vadd.xlane.f32.xlu1 %v719_v9 }
0x16df   :  { %v721_v11 = vpop.xlane.xlu1 %720 }
0x16e0   :  { %v729_v13 = vadd.f32 %v749_v10, %v721_v11 }
0x16e2   :  { %731 = vst.msk [vmem:[%s1094_s6 - $0x6] sm:$0xc0] %vm730_vm6, %v729_v13 }

</bundles_post_ra>
